<compile_context>
chip_gen: v6e
topology: v6e:2x2x1
jax: 0.10.0
libtpu: 0.0.40
codegen_flags: <defaults>
</compile_context>

<pallas_src>
import functools

import jax
import jax.numpy as jnp
from jax.experimental import pallas as pl
from jax.experimental.pallas import tpu as pltpu


# ----------------------------------------------------------------------------
# Fused kernel: backbone conv-bn-relu -> packed-heads conv-bn-relu -> avg pool
# ----------------------------------------------------------------------------
def fused_model_kernel(x_ref, wb_ref, sb_ref, wh_ref, sh_ref, o_ref, acc_ref,
                       *, inv_hw):
    """One grid step = (batch b, HW tile t).

    x_ref:   (T, Cin)      bf16   tile of one batch element (channel-last)
    wb_ref:  (Cin, Cf)     bf16   backbone 1x1 conv weight, BN scale folded in
    sb_ref:  (1, Cf)       f32    backbone folded shift (bias/BN)
    wh_ref:  (Cf, Kp)      bf16   both heads packed + zero-padded to 128 lanes
    sh_ref:  (1, Kp)       f32    packed head shifts
    o_ref:   (1, Kp)       f32    pooled logits for this batch element
    acc_ref: (1, Kp)       f32    running sum over HW tiles (VMEM scratch)
    """
    t = pl.program_id(1)

    @pl.when(t == 0)
    def _init():
        acc_ref[...] = jnp.zeros_like(acc_ref)

    # Backbone: 1x1 conv (MXU, bf16 in / f32 acc) + shift + ReLU.  Feature map
    # never leaves VMEM.
    feat = jnp.dot(x_ref[...], wb_ref[...], preferred_element_type=jnp.float32)
    feat = jnp.maximum(feat + sb_ref[...], 0.0)

    # Both heads in one lane-dense matmul, then shift + ReLU.
    z = jnp.dot(feat.astype(jnp.bfloat16), wh_ref[...],
                preferred_element_type=jnp.float32)
    z = jnp.maximum(z + sh_ref[...], 0.0)

    # AdaptiveAvgPool2d(1): accumulate sum over spatial positions.
    acc_ref[...] += jnp.sum(z, axis=0, keepdims=True)

    @pl.when(t == pl.num_programs(1) - 1)
    def _finalize():
        o_ref[...] = (acc_ref[...] * inv_hw).astype(o_ref.dtype)


# ----------------------------------------------------------------------------
# Wrapper
# ----------------------------------------------------------------------------
def _pick_hw_tile(hw, max_tile=2048):
    """Largest divisor of hw that is a multiple of 8 and <= max_tile."""
    for cand in range(min(hw, max_tile), 7, -1):
        if hw % cand == 0 and cand % 8 == 0:
            return cand
    # TODO(synk): ragged HW (not a multiple of 8) would need masked tiles.
    return hw


def fused_forward(x, wb, sb, wh, sh):
    """x: (B, HW, Cin) bf16 -> pooled logits (B, Kp) f32."""
    B, HW, Cin = x.shape
    Cf = wb.shape[1]
    Kp = wh.shape[1]
    T = _pick_hw_tile(HW)
    n_t = HW // T
    inv_hw = 1.0 / float(HW)

    kernel = functools.partial(fused_model_kernel, inv_hw=inv_hw)

    out = pl.pallas_call(
        kernel,
        out_shape=jax.ShapeDtypeStruct((B, 1, Kp), jnp.float32),
        grid_spec=pltpu.PrefetchScalarGridSpec(
            num_scalar_prefetch=0,
            grid=(B, n_t),  # batch parallel (2 TCs on v7x), HW tiles reduced
            in_specs=[
                pl.BlockSpec((pl.Squeezed(), T, Cin), lambda b, t: (b, t, 0)),
                pl.BlockSpec((Cin, Cf), lambda b, t: (0, 0)),
                pl.BlockSpec((1, Cf), lambda b, t: (0, 0)),
                pl.BlockSpec((Cf, Kp), lambda b, t: (0, 0)),
                pl.BlockSpec((1, Kp), lambda b, t: (0, 0)),
            ],
            out_specs=pl.BlockSpec((pl.Squeezed(), 1, Kp), lambda b, t: (b, 0, 0)),
            scratch_shapes=[pltpu.VMEM((1, Kp), jnp.float32)],
        ),
        compiler_params=pltpu.CompilerParams(
            dimension_semantics=("parallel", "arbitrary"),
            # Tiles are sized so 2x double-buffered bf16 input tiles + weights
            # + accumulator stay far below this on v5e/v6e/v7x.
            vmem_limit_bytes=32 * 1024 * 1024,
        ),
    )(x, wb, sb, wh, sh)
    return out.reshape(B, Kp)


# ----------------------------------------------------------------------------
# Parameter construction (deterministic; Conv bias + BN folded, scale in weight)
# ----------------------------------------------------------------------------
def make_convbnrelu_params(key, cin, cout, eps=1e-5):
    kw, kb, kg, kbe, km, kv = jax.random.split(key, 6)
    w = jax.random.normal(kw, (cin, cout), jnp.float32) * 0.1      # 1x1 conv
    b = jax.random.normal(kb, (cout,), jnp.float32) * 0.01         # conv bias
    gamma = 1.0 + 0.1 * jax.random.normal(kg, (cout,), jnp.float32)
    beta = 0.1 * jax.random.normal(kbe, (cout,), jnp.float32)
    running_mean = 0.1 * jax.random.normal(km, (cout,), jnp.float32)
    running_var = 1.0 + 0.1 * jax.random.uniform(kv, (cout,), jnp.float32)
    s = gamma / jnp.sqrt(running_var + eps)                        # eval-mode BN
    w_folded = (w * s[None, :]).astype(jnp.bfloat16)               # scale -> weight
    shift = (b * s + beta - running_mean * s).reshape(1, cout).astype(jnp.float32)
    return w_folded, shift


def build_params(key, in_channels, c_feat, num_classes, num_state):
    kb, kc, ks = jax.random.split(key, 3)
    # TODO(synk): the real backbone is an arbitrary injected nn.Module; a
    # synthetic 1x1 Conv2dBnRelu (in_channels -> c_feat) stands in for it.
    wb, sb = make_convbnrelu_params(kb, in_channels, c_feat)
    wc, sc = make_convbnrelu_params(kc, c_feat, num_classes)
    ws, ss = make_convbnrelu_params(ks, c_feat, num_state)

    # Pack both heads along Cout and zero-pad to a full 128-lane width.
    K = num_classes + num_state
    Kp = max(128, ((K + 127) // 128) * 128)
    wh = jnp.zeros((c_feat, Kp), jnp.bfloat16)
    wh = wh.at[:, :num_classes].set(wc).at[:, num_classes:K].set(ws)
    sh = jnp.zeros((1, Kp), jnp.float32)
    sh = sh.at[:, :num_classes].set(sc).at[:, num_classes:K].set(ss)

    return {"wb": wb, "sb": sb, "wh": wh, "sh": sh,
            "num_classes": num_classes, "num_state": num_state}


def anomaly_model04_forward(x_nchw, params):
    """x_nchw: (B, Cin, H, W) f32 -> (pred_class (B, num_classes),
                                      pred_state (B, num_state))."""
    B, Cin, H, W = x_nchw.shape
    HW = H * W
    # Single NCHW -> channel-last conversion + bf16 cast (halves HBM traffic
    # into the fused kernel).
    x = jnp.transpose(x_nchw, (0, 2, 3, 1)).reshape(B, HW, Cin).astype(jnp.bfloat16)

    pooled = fused_forward(x, params["wb"], params["sb"],
                           params["wh"], params["sh"])

    nc, ns = params["num_classes"], params["num_state"]
    pred_class = pooled[:, :nc]
    pred_state = pooled[:, nc:nc + ns]
    return pred_class, pred_state


if __name__ == "__main__":
    B, in_channels, input_size = 2, 4, 16
    c_feat, num_classes, num_state = 32, 8, 6

    root = jax.random.PRNGKey(0)
    kx, kp = jax.random.split(root, 2)

    params = build_params(kp, in_channels, c_feat, num_classes, num_state)
    x = jax.random.normal(kx, (B, in_channels, input_size, input_size), jnp.float32)

    pred_class, pred_state = anomaly_model04_forward(x, params)
    jax.block_until_ready((pred_class, pred_state))

    assert pred_class.shape == (B, num_classes)
    assert pred_state.shape == (B, num_state)
    print("KERNEL_OK")
</pallas_src>

<mosaic_0001>
module attributes {stable_mosaic.version = 11 : i64} {
  func.func @fused_model_kernel(%arg0: i32, %arg1: i32, %arg2: memref<1x256x4xbf16, #tpu.memory_space<vmem>>, %arg3: memref<4x32xbf16, #tpu.memory_space<vmem>>, %arg4: memref<1x32xf32, #tpu.memory_space<vmem>>, %arg5: memref<32x128xbf16, #tpu.memory_space<vmem>>, %arg6: memref<1x128xf32, #tpu.memory_space<vmem>>, %arg7: memref<1x1x128xf32, #tpu.memory_space<vmem>>, %arg8: memref<1x128xf32, #tpu.memory_space<vmem>>) attributes {dimension_semantics = [#tpu.dimension_semantics<parallel>, #tpu.dimension_semantics<arbitrary>], iteration_bounds = array<i64: 2, 1>, scalar_prefetch = 0 : i64, scratch_operands = 1 : i64, tpu.core_type = #tpu.core_type<tc>, window_params = [{transform_indices = @transform_0, window_bounds = array<i64: 1, 256, 4>}, {pipeline_mode = #tpu.pipeline_mode<synchronous>, transform_indices = @transform_1, window_bounds = array<i64: 4, 32>}, {pipeline_mode = #tpu.pipeline_mode<synchronous>, transform_indices = @transform_2, window_bounds = array<i64: 1, 32>}, {pipeline_mode = #tpu.pipeline_mode<synchronous>, transform_indices = @transform_3, window_bounds = array<i64: 32, 128>}, {pipeline_mode = #tpu.pipeline_mode<synchronous>, transform_indices = @transform_4, window_bounds = array<i64: 1, 128>}, {transform_indices = @transform_5, window_bounds = array<i64: 1, 1, 128>}]} {
    %c0_i32 = arith.constant 0 : i32
    %0 = arith.cmpi eq, %arg1, %c0_i32 : i32
    %1 = arith.extui %0 : i1 to i32
    %c0_i32_0 = arith.constant 0 : i32
    %2 = arith.cmpi ne, %1, %c0_i32_0 : i32
    scf.if %2 {
      %cst_21 = arith.constant 0.000000e+00 : f32
      %28 = vector.broadcast %cst_21 : f32 to vector<1x128xf32>
      %c0_22 = arith.constant 0 : index
      %c0_23 = arith.constant 0 : index
      %29 = vector.load %arg8[%c0_22, %c0_23] : memref<1x128xf32, #tpu.memory_space<vmem>>, vector<1x128xf32>
      tpu.vector_store %arg8[%c0_22, %c0_23], %28 {strides = array<i32>} : memref<1x128xf32, #tpu.memory_space<vmem>>, vector<1x128xf32>,
    } else {
    }
    %c0 = arith.constant 0 : index
    %c0_1 = arith.constant 0 : index
    %c0_2 = arith.constant 0 : index
    %3 = vector.load %arg2[%c0, %c0_1, %c0_2] : memref<1x256x4xbf16, #tpu.memory_space<vmem>>, vector<1x256x4xbf16>
    %4 = vector.shape_cast %3 : vector<1x256x4xbf16> to vector<256x4xbf16>
    %c0_3 = arith.constant 0 : index
    %c0_4 = arith.constant 0 : index
    %5 = vector.load %arg3[%c0_3, %c0_4] : memref<4x32xbf16, #tpu.memory_space<vmem>>, vector<4x32xbf16>
    %cst = arith.constant dense<0.000000e+00> : vector<256x32xf32>
    %6 = tpu.matmul %4, %5, %cst {dimension_numbers = #tpu.dot_dimension_numbers<[1], [0], [0], [1], [0, 0, 1, 1], [], []>} : vector<256x4xbf16>, vector<4x32xbf16>, vector<256x32xf32> -> vector<256x32xf32>
    %c0_5 = arith.constant 0 : index
    %c0_6 = arith.constant 0 : index
    %7 = vector.load %arg4[%c0_5, %c0_6] : memref<1x32xf32, #tpu.memory_space<vmem>>, vector<1x32xf32>
    %8 = vector.broadcast %7 : vector<1x32xf32> to vector<256x32xf32>
    %9 = arith.addf %6, %8 : vector<256x32xf32>
    %cst_7 = arith.constant 0.000000e+00 : f32
    %10 = vector.broadcast %cst_7 : f32 to vector<256x32xf32>
    %11 = arith.maximumf %9, %10 : vector<256x32xf32>
    %12 = arith.truncf %11 : vector<256x32xf32> to vector<256x32xbf16>
    %c0_8 = arith.constant 0 : index
    %c0_9 = arith.constant 0 : index
    %13 = vector.load %arg5[%c0_8, %c0_9] : memref<32x128xbf16, #tpu.memory_space<vmem>>, vector<32x128xbf16>
    %cst_10 = arith.constant dense<0.000000e+00> : vector<256x128xf32>
    %14 = tpu.matmul %12, %13, %cst_10 {dimension_numbers = #tpu.dot_dimension_numbers<[1], [0], [0], [1], [0, 0, 1, 1], [], []>} : vector<256x32xbf16>, vector<32x128xbf16>, vector<256x128xf32> -> vector<256x128xf32>
    %c0_11 = arith.constant 0 : index
    %c0_12 = arith.constant 0 : index
    %15 = vector.load %arg6[%c0_11, %c0_12] : memref<1x128xf32, #tpu.memory_space<vmem>>, vector<1x128xf32>
    %16 = vector.broadcast %15 : vector<1x128xf32> to vector<256x128xf32>
    %17 = arith.addf %14, %16 : vector<256x128xf32>
    %cst_13 = arith.constant 0.000000e+00 : f32
    %18 = vector.broadcast %cst_13 : f32 to vector<256x128xf32>
    %19 = arith.maximumf %17, %18 : vector<256x128xf32>
    %c0_14 = arith.constant 0 : index
    %c0_15 = arith.constant 0 : index
    %20 = vector.load %arg8[%c0_14, %c0_15] : memref<1x128xf32, #tpu.memory_space<vmem>>, vector<1x128xf32>
    %cst_16 = arith.constant dense<0.000000e+00> : vector<128xf32>
    %21 = vector.multi_reduction <add>, %19, %cst_16 [0] : vector<256x128xf32> to vector<128xf32>
    %22 = vector.shape_cast %21 : vector<128xf32> to vector<1x128xf32>
    %23 = arith.addf %20, %22 : vector<1x128xf32>
    %c0_17 = arith.constant 0 : index
    %c0_18 = arith.constant 0 : index
    %24 = vector.load %arg8[%c0_17, %c0_18] : memref<1x128xf32, #tpu.memory_space<vmem>>, vector<1x128xf32>
    tpu.vector_store %arg8[%c0_17, %c0_18], %23 {strides = array<i32>} : memref<1x128xf32, #tpu.memory_space<vmem>>, vector<1x128xf32>,
    %c0_i32_19 = arith.constant 0 : i32
    %25 = arith.cmpi eq, %arg1, %c0_i32_19 : i32
    %26 = arith.extui %25 : i1 to i32
    %c0_i32_20 = arith.constant 0 : i32
    %27 = arith.cmpi ne, %26, %c0_i32_20 : i32
    scf.if %27 {
      %c0_21 = arith.constant 0 : index
      %c0_22 = arith.constant 0 : index
      %28 = vector.load %arg8[%c0_21, %c0_22] : memref<1x128xf32, #tpu.memory_space<vmem>>, vector<1x128xf32>
      %cst_23 = arith.constant 3.906250e-03 : f32
      %29 = vector.broadcast %cst_23 : f32 to vector<1x128xf32>
      %30 = arith.mulf %28, %29 : vector<1x128xf32>
      %c0_24 = arith.constant 0 : index
      %c0_25 = arith.constant 0 : index
      %c0_26 = arith.constant 0 : index
      %31 = vector.load %arg7[%c0_24, %c0_25, %c0_26] : memref<1x1x128xf32, #tpu.memory_space<vmem>>, vector<1x1x128xf32>
      %32 = vector.shape_cast %31 : vector<1x1x128xf32> to vector<1x128xf32>
      %33 = vector.shape_cast %30 : vector<1x128xf32> to vector<1x1x128xf32>
      tpu.vector_store %arg7[%c0_24, %c0_25, %c0_26], %33 {strides = array<i32>} : memref<1x1x128xf32, #tpu.memory_space<vmem>>, vector<1x1x128xf32>,
    } else {
    }
    return
  }
  func.func @transform_0(%arg0: i32, %arg1: i32) -> (i32, i32, i32) {
    %c0_i32 = arith.constant 0 : i32
    %c0_i32_0 = arith.constant 0 : i32
    return %arg0, %arg1, %c0_i32 : i32, i32, i32
  }
  func.func @transform_1(%arg0: i32, %arg1: i32) -> (i32, i32) {
    %c0_i32 = arith.constant 0 : i32
    %c0_i32_0 = arith.constant 0 : i32
    %c0_i32_1 = arith.constant 0 : i32
    return %c0_i32, %c0_i32_0 : i32, i32
  }
  func.func @transform_2(%arg0: i32, %arg1: i32) -> (i32, i32) {
    %c0_i32 = arith.constant 0 : i32
    %c0_i32_0 = arith.constant 0 : i32
    %c0_i32_1 = arith.constant 0 : i32
    return %c0_i32, %c0_i32_0 : i32, i32
  }
  func.func @transform_3(%arg0: i32, %arg1: i32) -> (i32, i32) {
    %c0_i32 = arith.constant 0 : i32
    %c0_i32_0 = arith.constant 0 : i32
    %c0_i32_1 = arith.constant 0 : i32
    return %c0_i32, %c0_i32_0 : i32, i32
  }
  func.func @transform_4(%arg0: i32, %arg1: i32) -> (i32, i32) {
    %c0_i32 = arith.constant 0 : i32
    %c0_i32_0 = arith.constant 0 : i32
    %c0_i32_1 = arith.constant 0 : i32
    return %c0_i32, %c0_i32_0 : i32, i32
  }
  func.func @transform_5(%arg0: i32, %arg1: i32) -> (i32, i32, i32) {
    %c0_i32 = arith.constant 0 : i32
    %c0_i32_0 = arith.constant 0 : i32
    %c0_i32_1 = arith.constant 0 : i32
    return %arg0, %c0_i32, %c0_i32_0 : i32, i32, i32
  }
}

</mosaic_0001>

<bundles_post_ra>
// kernel: tpu_custom_call.1
= control target key start
LH: loop header
LB: loop body
LE: loop exit
PB: predicated region body
PF: predicated region fallthrough
CT: control target
= control target key end

     0   :  { %10 = vsyncpa [#allocation4], 0  ;;  %s1616_s0 = inlined_call_operand.vmem [shape: bf16[2,256,4], index: 0, kind: input, shape index: {}]   ;;  %s1617_s1 = inlined_call_operand.vmem [shape: bf16[4,32], index: 1, kind: input, shape index: {}]   ;;  %s1618_s2 = inlined_call_operand.vmem [shape: f32[1,32], index: 2, kind: input, shape index: {}]   ;;  %s1619_s3 = inlined_call_operand.vmem [shape: bf16[32,128], index: 3, kind: input, shape index: {}]   ;;  %s1620_s4 = inlined_call_operand.vmem [shape: f32[1,128], index: 4, kind: input, shape index: {}]   ;;  %s1621_s5 = inlined_call_operand.hbm [shape: f32[2,1,128], index: 5, kind: output, shape index: {}]  }
   0x1   :  { %12 = vsyncpa [#allocation4 + $0x1], 0  ;;  %s1384_s18 = smov 0   ;;  %s1386_s19 = smov 0  }
   0x2   :  { %s1388_s20 = smov 0   ;;  %s1390_s21 = smov 0  }
   0x3   :  { %s1392_s22 = smov 0   ;;  %s1394_s23 = smov 0  }
   0x4 LB: > { %s1031_s24 = sadd.s32 4294967295, %s1350_s23   ;;  %s1032_s25 = sadd.s32 4294967294, %s1350_s23   ;;  %s1350_s23 = sphi %s1394_s23, %s18_s23   ;;  %s1346_s22 = sphi %s1392_s22, %s1628_s22   ;;  %s1342_s21 = sphi %s1390_s21, %s1627_s21   ;;  %s1338_s20 = sphi %s1388_s20, %s1626_s20   ;;  %s1334_s19 = sphi %s1386_s19, %s1625_s19   ;;  %s1330_s18 = sphi %s1384_s18, %s1624_s18  }
   0x5   : > { %s30_s26 = sadd.s32 1, %s1346_s22  ;;  %s149_s27 = sadd.s32 1, %s1338_s20 }
   0x6   : > { %p32_p0 = scmp.ge.s32.totalorder %s30_s26, 2  ;;  %p159_p1 = scmp.ne.s32.totalorder %s1338_s20, %s1334_s19 }
   0x7   : > { %p160_p2 = scmp.eq.s32.totalorder %s1031_s24, 1  ;;  %p165_p3 = scmp.ne.s32.totalorder %s1334_s19, %s1330_s18 }
   0x8   : > { %s1630_s26 = smov (%p32_p0, %s30_s26), 0  ;;  %p166_p5 = scmp.eq.s32.totalorder %s1032_s25, 1 }
   0x9   : > { %p1424_p4 = por %p160_p2, %p159_p1  ;;  %s146_s29 = ssub.s32 %s1346_s22, %s1630_s26 }
   0xa   : > { %p1035_p6 = scmp.ge.s32.totalorder %s1350_s23, 1  ;;  %p147_p7 = scmp.eq.s32.totalorder %s146_s29, 0 }
   0xb   : > { %p1431_p8 = por %p166_p5, %p165_p3  ;;  %p209_p9 = scmp.lt.s32.totalorder %s1350_s23, 3 }
   0xc   : > { %s1437_s6 = scalar_select %p147_p7, %s1338_s20, %s149_s27  }
   0xd   : > { %p210_p10 = pnand %p1035_p6, %p209_p9 }
   0xe   : > { %p241_p11 = scmp.lt.s32.totalorder (!%p210_p10), %s1342_s21, 1  ;;  %s238_s7 = sand.u32 (!%p210_p10), 1, %s1334_s19  }
   0xf   : > { %213 = sbr.rel (%p210_p10) target bundleno = 534 (0x216), region = 40  ;;  %s1090_s8 = sshll.u32 (!%p210_p10), %s1342_s21, 4 }
  0x10   : > { %s950_s14 = scalar_lea.sflag (!%p210_p10), [#allocation4], %s238_s7  ;;  %s1353_s16 = smov (!%p210_p10), [#allocation3]  }
  0x11   : > { %s1278_s17 = sshll.u32 (!%p210_p10), %s1353_s16, 4  ;;  %s1279_s17 = int_to_ptr.vmem [resolvable:$false] %s1278_s17 }
  0x14   : > { %v288_v0 = vld [vmem:[%s1617_s1] sm:$0x3]  ;;  %vm425_vm0 = vcmask 1041408   ;;  %s242_s9 = scalar_select %p241_p11, %s1342_s21, 1  ;;  %vm376_vm1 = vcmask 31744   ;;  %v1272_v18 = vld [vmem:[%s1619_s3 + $0x8] sm:$0xff]  }
  0x15   : > { %1199 = vmatprep.subr.msk.bf16.mxu0 %vm425_vm0, %v288_v0  ;;  %v427_v1 = vsel %vm425_vm0, %v288_v0, 0  ;;  %1163 = vmatprep.subr.bf16.mxu1 %v1272_v18  ;;  %v1273_v19 = vld [vmem:[%s1619_s3] sm:$0xff]   ;;  %vm661_vm2 = vcmask 261120   ;;  %s1280_s21 = scalar_lea.vmem %s1279_s17, 32 }
  0x16   : > { %1130 = vmatpush3.bf16.msra.mxu0 %v427_v1  ;;  %s1093_s10 = sshll.u32 %s242_s9, 7  ;;  %1164 = vmatpush3.bf16.msra.mxu1 %v1272_v18  ;;  %v1490_v22 = vld [vmem:[%s1618_s2] ss:$0 sm:$0xff]  ;;  %s239_s9 = scalar_lea.vmem [#allocation3], %s238_s7 }
  0x17   : > { %s1447_s13 = scalar_lea.vmem %s1616_s0, %s1093_s10  ;;  %1165 = vmatprep.subr.bf16.mxu1 %v1273_v19  ;;  %s962_s10 = sshll.u32 %s239_s9, 4  ;;  %s963_s10 = int_to_ptr.vmem [resolvable:$true] %s962_s10 }
  0x18   : > { %v1256_v2 = vld [vmem:[%s1447_s13] sm:$0xff]   ;;  %v1257_v3 = vld [vmem:[%s1447_s13 + $0x8] sm:$0xff]   ;;  %v1258_v4 = vld [vmem:[%s1447_s13 + $0x10] sm:$0xff]   ;;  %s1274_s15 = scalar_lea.vmem %s963_s10, 16  ;;  %p1281_p1 = scmp.lt.s32.totalorder %s963_s10, %s1279_s17 }
  0x19   : > { %1131 = vmatprep.mubr.msk.bf16.mxu0 %vm376_vm1, %v1256_v2  ;;  %v1259_v5 = vld [vmem:[%s1447_s13 + $0x18] sm:$0xff]   ;;  %v1260_v6 = vld [vmem:[%s1447_s13 + $0x20] sm:$0xff]   ;;  %v1261_v7 = vld [vmem:[%s1447_s13 + $0x28] sm:$0xff]   ;;  %p1275_p12 = scmp.ne.s32.totalorder %s963_s10, %s1274_s15  ;;  %p1282_p2 = scmp.lt.s32.totalorder %s1280_s21, %s1274_s15 }
  0x1a   : > { %1132 = vmatmul.mubr.msk.bf16.vlgmr.msra.gmra.mxu0 %vm376_vm1, %v1257_v3  ;;  %v1262_v8 = vld [vmem:[%s1447_s13 + $0x30] sm:$0xff]   ;;  %v1263_v9 = vld [vmem:[%s1447_s13 + $0x38] sm:$0xff]   ;;  %v1264_v10 = vld [vmem:[%s1447_s13 + $0x40] sm:$0xff]   ;;  %1166 = vmatpush3.bf16.msra.mxu1 %v1273_v19 }
  0x1b   : > { %1135 = vmatprep.mubr.msk.bf16.mxu0 %vm376_vm1, %v1258_v4  ;;  %v1265_v11 = vld [vmem:[%s1447_s13 + $0x48] sm:$0xff]   ;;  %v1266_v12 = vld [vmem:[%s1447_s13 + $0x50] sm:$0xff]   ;;  %v1267_v13 = vld [vmem:[%s1447_s13 + $0x58] sm:$0xff]   ;;  %p1276_p13 = pnand %p1275_p12, %p1424_p4  ;;  %p1283_p3 = por %p1282_p2, %p1281_p1 }
  0x1c   : > { %v1268_v14 = vld [vmem:[%s1447_s13 + $0x60] sm:$0xff]   ;;  %v1269_v15 = vld [vmem:[%s1447_s13 + $0x68] sm:$0xff]   ;;  %v1270_v16 = vld [vmem:[%s1447_s13 + $0x70] sm:$0xff]  }
  0x1d   : > { %v1271_v17 = vld [vmem:[%s1447_s13 + $0x78] sm:$0xff]   ;;  %s960_s13 = scalar_lea.hbm %s1621_s5, %s1090_s8  ;;  %p1277_p0 = pneg %p1276_p13 }
  0x1f   : > { %p1284_p5 = pnand %p1283_p3, %p1277_p0 }
  0x22   : > { %1136 = vmatmul.mubr.msk.bf16.gmra.mxu0 %vm376_vm1, %v1259_v5 }
  0x23   : > { %1139 = vmatprep.mubr.msk.bf16.mxu0 %vm376_vm1, %v1260_v6 }
  0x2a   : > { %1140 = vmatmul.mubr.msk.bf16.gmra.mxu0 %vm376_vm1, %v1261_v7 }
  0x2b   : > { %1143 = vmatprep.mubr.msk.bf16.mxu0 %vm376_vm1, %v1262_v8 }
  0x32   : > { %1144 = vmatmul.mubr.msk.bf16.gmra.mxu0 %vm376_vm1, %v1263_v9 }
  0x33   : > { %1147 = vmatprep.mubr.msk.bf16.mxu0 %vm376_vm1, %v1264_v10 }
  0x3a   : > { %1148 = vmatmul.mubr.msk.bf16.gmra.mxu0 %vm376_vm1, %v1265_v11 }
  0x3b   : > { %1151 = vmatprep.mubr.msk.bf16.mxu0 %vm376_vm1, %v1266_v12 }
  0x42   : > { %1152 = vmatmul.mubr.msk.bf16.gmra.mxu0 %vm376_vm1, %v1267_v13 }
  0x43   : > { %1155 = vmatprep.mubr.msk.bf16.mxu0 %vm376_vm1, %v1268_v14 }
  0x4a   : > { %1156 = vmatmul.mubr.msk.bf16.gmra.mxu0 %vm376_vm1, %v1269_v15 }
  0x4b   : > { %1159 = vmatprep.mubr.msk.bf16.mxu0 %vm376_vm1, %v1270_v16 }
  0x52   : > { %1160 = vmatmul.mubr.msk.bf16.gmra.mxu0 %vm376_vm1, %v1271_v17 }
  0xda   : > { %v1133_v20 = vpop.f32.mrf.mxu0 }
  0xdb   : > { %v472_v26 = vadd.f32 %v1133_v20, %v1490_v22 }
  0xdc   : > { %v463_v21 = vpop.f32.mrf.mxu0 }
  0xdd   : > { %v464_v24 = vadd.f32 %v1490_v22, %v463_v21  ;;  %v592_v33 = vmax.f32 %v472_v26, 0.0 }
  0xde   : > { %v1134_v23 = vpop.f32.mrf.mxu0 }
  0xdf   : > { %v475_v25 = vadd.f32 %v1134_v23, %v1490_v22  ;;  %v590_v31 = vmax.f32 %v464_v24, 0.0 }
  0xe0   : > { %v466_v27 = vpop.f32.mrf.mxu0 }
  0xe1   : > { %v467_v28 = vadd.f32 %v1490_v22, %v466_v27  ;;  %v593_v29 = vmax.f32 %v475_v25, 0.0 }
  0xe2   : > { %v1137_v30 = vpop.f32.mrf.mxu0 }
  0xe3   : > { %v591_v32 = vmax.f32 %v467_v28, 0.0  ;;  %v623_v36 = vpack.c.bf16 %v593_v29, %v592_v33  ;;  %v488_v40 = vadd.f32 %v1137_v30, %v1490_v22 }
  0xe4   : > { %v479_v34 = vpop.f32.mrf.mxu0 }
  0xe5   : > { %v622_v35 = vpack.c.bf16 %v591_v32, %v590_v31  ;;  %v480_v38 = vadd.f32 %v1490_v22, %v479_v34  ;;  %v596_v47 = vmax.f32 %v488_v40, 0.0 }
  0xe6   : > { %v1138_v37 = vpop.f32.mrf.mxu0 }
  0xe7   : > { %v491_v39 = vadd.f32 %v1138_v37, %v1490_v22  ;;  %1167 = vmatprep.mubr.msk.bf16.mxu1 %vm661_vm2, %v622_v35  ;;  %v594_v45 = vmax.f32 %v480_v38, 0.0 }
  0xe8   : > { %v482_v41 = vpop.f32.mrf.mxu0  ;;  %1168 = vmatmul.mubr.msk.bf16.vlgmr.msra.gmra.mxu1 %vm661_vm2, %v623_v36 }
  0xe9   : > { %v483_v42 = vadd.f32 %v1490_v22, %v482_v41  ;;  %v597_v43 = vmax.f32 %v491_v39, 0.0 }
  0xea   : > { %v1141_v44 = vpop.f32.mrf.mxu0 }
  0xeb   : > { %v595_v46 = vmax.f32 %v483_v42, 0.0  ;;  %v625_v50 = vpack.c.bf16 %v597_v43, %v596_v47  ;;  %v504_v54 = vadd.f32 %v1141_v44, %v1490_v22 }
  0xec   : > { %v495_v48 = vpop.f32.mrf.mxu0 }
  0xed   : > { %v624_v49 = vpack.c.bf16 %v595_v46, %v594_v45  ;;  %v496_v52 = vadd.f32 %v1490_v22, %v495_v48  ;;  %v600_v61 = vmax.f32 %v504_v54, 0.0 }
  0xee   : > { %v1142_v51 = vpop.f32.mrf.mxu0 }
  0xef   : > { %v507_v53 = vadd.f32 %v1142_v51, %v1490_v22  ;;  %1171 = vmatprep.mubr.msk.bf16.mxu1 %vm661_vm2, %v624_v49  ;;  %v598_v59 = vmax.f32 %v496_v52, 0.0 }
  0xf0   : > { %v498_v55 = vpop.f32.mrf.mxu0  ;;  %1172 = vmatmul.mubr.msk.bf16.gmra.mxu1 %vm661_vm2, %v625_v50 }
  0xf1   : > { %v499_v56 = vadd.f32 %v1490_v22, %v498_v55  ;;  %v601_v57 = vmax.f32 %v507_v53, 0.0 }
  0xf2   : > { %v1145_v58 = vpop.f32.mrf.mxu0 }
  0xf3   : > { %v599_v60 = vmax.f32 %v499_v56, 0.0  ;;  %v627_v0 = vpack.c.bf16 %v601_v57, %v600_v61  ;;  %v520_v4 = vadd.f32 %v1145_v58, %v1490_v22 }
  0xf4   : > { %v511_v62 = vpop.f32.mrf.mxu0 }
  0xf5   : > { %v626_v63 = vpack.c.bf16 %v599_v60, %v598_v59  ;;  %v512_v2 = vadd.f32 %v1490_v22, %v511_v62  ;;  %v604_v11 = vmax.f32 %v520_v4, 0.0 }
  0xf6   : > { %v1146_v1 = vpop.f32.mrf.mxu0 }
  0xf7   : > { %v523_v3 = vadd.f32 %v1146_v1, %v1490_v22  ;;  %1175 = vmatprep.mubr.msk.bf16.mxu1 %vm661_vm2, %v626_v63  ;;  %v602_v9 = vmax.f32 %v512_v2, 0.0 }
  0xf8   : > { %v514_v5 = vpop.f32.mrf.mxu0  ;;  %1176 = vmatmul.mubr.msk.bf16.gmra.mxu1 %vm661_vm2, %v627_v0 }
  0xf9   : > { %v515_v6 = vadd.f32 %v1490_v22, %v514_v5  ;;  %v605_v7 = vmax.f32 %v523_v3, 0.0 }
  0xfa   : > { %v1149_v8 = vpop.f32.mrf.mxu0 }
  0xfb   : > { %v603_v10 = vmax.f32 %v515_v6, 0.0  ;;  %v629_v14 = vpack.c.bf16 %v605_v7, %v604_v11  ;;  %v536_v18 = vadd.f32 %v1149_v8, %v1490_v22  ;;  %v1352_v6 = vmov 0.0  }
  0xfc   : > { %v527_v12 = vpop.f32.mrf.mxu0  ;;  %255 = vst [vmem:[#allocation2] sm:$0x1] %v1352_v6 }
  0xfd   : > { %v628_v13 = vpack.c.bf16 %v603_v10, %v602_v9  ;;  %v528_v16 = vadd.f32 %v1490_v22, %v527_v12  ;;  %v608_v26 = vmax.f32 %v536_v18, 0.0  ;;  %v1543_v9 = vld [vmem:[%s1620_s4] ss:$0 sm:$0xff] }
  0xfe   : > { %v1150_v15 = vpop.f32.mrf.mxu0 }
  0xff   : > { %v539_v17 = vadd.f32 %v1150_v15, %v1490_v22  ;;  %1179 = vmatprep.mubr.msk.bf16.mxu1 %vm661_vm2, %v628_v13  ;;  %v606_v24 = vmax.f32 %v528_v16, 0.0 }
 0x100   : > { %v530_v19 = vpop.f32.mrf.mxu0  ;;  %1180 = vmatmul.mubr.msk.bf16.gmra.mxu1 %vm661_vm2, %v629_v14 }
 0x101   : > { %v531_v20 = vadd.f32 %v1490_v22, %v530_v19  ;;  %v609_v21 = vmax.f32 %v539_v17, 0.0 }
 0x102   : > { %v1153_v23 = vpop.f32.mrf.mxu0 }
 0x103   : > { %v607_v25 = vmax.f32 %v531_v20, 0.0  ;;  %v631_v29 = vpack.c.bf16 %v609_v21, %v608_v26  ;;  %v552_v33 = vadd.f32 %v1153_v23, %v1490_v22 }
 0x104   : > { %v543_v27 = vpop.f32.mrf.mxu0 }
 0x105   : > { %v630_v28 = vpack.c.bf16 %v607_v25, %v606_v24  ;;  %v544_v31 = vadd.f32 %v1490_v22, %v543_v27  ;;  %v612_v40 = vmax.f32 %v552_v33, 0.0 }
 0x106   : > { %v1154_v30 = vpop.f32.mrf.mxu0 }
 0x107   : > { %v555_v32 = vadd.f32 %v1154_v30, %v1490_v22  ;;  %1183 = vmatprep.mubr.msk.bf16.mxu1 %vm661_vm2, %v630_v28  ;;  %v610_v38 = vmax.f32 %v544_v31, 0.0 }
 0x108   : > { %v546_v34 = vpop.f32.mrf.mxu0  ;;  %1184 = vmatmul.mubr.msk.bf16.gmra.mxu1 %vm661_vm2, %v631_v29 }
 0x109   : > { %v547_v35 = vadd.f32 %v1490_v22, %v546_v34  ;;  %v613_v36 = vmax.f32 %v555_v32, 0.0 }
 0x10a   : > { %v1157_v37 = vpop.f32.mrf.mxu0 }
 0x10b   : > { %v611_v39 = vmax.f32 %v547_v35, 0.0  ;;  %v633_v43 = vpack.c.bf16 %v613_v36, %v612_v40  ;;  %v568_v47 = vadd.f32 %v1157_v37, %v1490_v22 }
 0x10c   : > { %v559_v41 = vpop.f32.mrf.mxu0 }
 0x10d   : > { %v632_v42 = vpack.c.bf16 %v611_v39, %v610_v38  ;;  %v560_v45 = vadd.f32 %v1490_v22, %v559_v41  ;;  %v616_v54 = vmax.f32 %v568_v47, 0.0 }
 0x10e   : > { %v1158_v44 = vpop.f32.mrf.mxu0 }
 0x10f   : > { %v571_v46 = vadd.f32 %v1158_v44, %v1490_v22  ;;  %1187 = vmatprep.mubr.msk.bf16.mxu1 %vm661_vm2, %v632_v42  ;;  %v614_v52 = vmax.f32 %v560_v45, 0.0 }
 0x110   : > { %v562_v48 = vpop.f32.mrf.mxu0  ;;  %1188 = vmatmul.mubr.msk.bf16.gmra.mxu1 %vm661_vm2, %v633_v43 }
 0x111   : > { %v563_v49 = vadd.f32 %v1490_v22, %v562_v48  ;;  %v617_v50 = vmax.f32 %v571_v46, 0.0 }
 0x112   : > { %v1161_v51 = vpop.f32.mrf.mxu0 }
 0x113   : > { %v615_v53 = vmax.f32 %v563_v49, 0.0  ;;  %v635_v57 = vpack.c.bf16 %v617_v50, %v616_v54  ;;  %v584_v61 = vadd.f32 %v1161_v51, %v1490_v22 }
 0x114   : > { %v575_v55 = vpop.f32.mrf.mxu0 }
 0x115   : > { %v634_v56 = vpack.c.bf16 %v615_v53, %v614_v52  ;;  %v576_v59 = vadd.f32 %v1490_v22, %v575_v55  ;;  %v620_v3 = vmax.f32 %v584_v61, 0.0 }
 0x116   : > { %v1162_v58 = vpop.f32.mrf.mxu0 }
 0x117   : > { %v587_v60 = vadd.f32 %v1162_v58, %v1490_v22  ;;  %1191 = vmatprep.mubr.msk.bf16.mxu1 %vm661_vm2, %v634_v56  ;;  %v618_v1 = vmax.f32 %v576_v59, 0.0 }
 0x118   : > { %v578_v62 = vpop.f32.mrf.mxu0  ;;  %1192 = vmatmul.mubr.msk.bf16.gmra.mxu1 %vm661_vm2, %v635_v57 }
 0x119   : > { %v579_v63 = vadd.f32 %v1490_v22, %v578_v62  ;;  %v621_v0 = vmax.f32 %v587_v60, 0.0 }
 0x11b   : > { %v619_v2 = vmax.f32 %v579_v63, 0.0  ;;  %v637_v5 = vpack.c.bf16 %v621_v0, %v620_v3 }
 0x11d   : > { %v636_v4 = vpack.c.bf16 %v619_v2, %v618_v1 }
 0x11f   : > { %1195 = vmatprep.mubr.msk.bf16.mxu1 %vm661_vm2, %v636_v4 }
 0x120   : > { %1196 = vmatmul.mubr.msk.bf16.gmra.mxu1 %vm661_vm2, %v637_v5 }
 0x1a8   : > { %v1169_v7 = vpop.f32.mrf.mxu1 }
 0x1a9   : > { %v753_v12 = vadd.f32 %v1169_v7, %v1543_v9 }
 0x1aa   : > { %v744_v8 = vpop.f32.mrf.mxu1 }
 0x1ab   : > { %v745_v10 = vadd.f32 %v1543_v9, %v744_v8  ;;  %v873_v19 = vmax.f32 %v753_v12, 0.0 }
 0x1ac   : > { %v1170_v22 = vpop.f32.mrf.mxu1 }
 0x1ad   : > { %v871_v15 = vmax.f32 %v745_v10, 0.0  ;;  %v756_v16 = vadd.f32 %v1170_v22, %v1543_v9 }
 0x1ae   : > { %v747_v11 = vpop.f32.mrf.mxu1 }
 0x1af   : > { %v748_v13 = vadd.f32 %v1543_v9, %v747_v11  ;;  %v874_v24 = vmax.f32 %v756_v16, 0.0 }
 0x1b0   : > { %v1173_v14 = vpop.f32.mrf.mxu1 }
 0x1b1   : > { %v872_v17 = vmax.f32 %v748_v13, 0.0  ;;  %v769_v27 = vadd.f32 %v1173_v14, %v1543_v9 }
 0x1b2   : > { %v760_v18 = vpop.f32.mrf.mxu1 }
 0x1b3   : > { %v904_v20 = vadd.f32 %v872_v17, %v871_v15  ;;  %v761_v21 = vadd.f32 %v1543_v9, %v760_v18  ;;  %v877_v36 = vmax.f32 %v769_v27, 0.0 }
 0x1b4   : > { %v1174_v23 = vpop.f32.mrf.mxu1 }
 0x1b5   : > { %v905_v25 = vadd.f32 %v904_v20, %v873_v19  ;;  %v875_v28 = vmax.f32 %v761_v21, 0.0  ;;  %v772_v33 = vadd.f32 %v1174_v23, %v1543_v9 }
 0x1b6   : > { %v763_v26 = vpop.f32.mrf.mxu1 }
 0x1b7   : > { %v906_v29 = vadd.f32 %v905_v25, %v874_v24  ;;  %v764_v30 = vadd.f32 %v1543_v9, %v763_v26  ;;  %v878_v40 = vmax.f32 %v772_v33, 0.0 }
 0x1b8   : > { %v1177_v31 = vpop.f32.mrf.mxu1 }
 0x1b9   : > { %v907_v32 = vadd.f32 %v906_v29, %v875_v28  ;;  %v876_v34 = vmax.f32 %v764_v30, 0.0  ;;  %v785_v43 = vadd.f32 %v1177_v31, %v1543_v9 }
 0x1ba   : > { %v776_v35 = vpop.f32.mrf.mxu1 }
 0x1bb   : > { %v908_v37 = vadd.f32 %v907_v32, %v876_v34  ;;  %v777_v38 = vadd.f32 %v1543_v9, %v776_v35  ;;  %v881_v52 = vmax.f32 %v785_v43, 0.0 }
 0x1bc   : > { %v1178_v39 = vpop.f32.mrf.mxu1 }
 0x1bd   : > { %v909_v41 = vadd.f32 %v908_v37, %v877_v36  ;;  %v879_v44 = vmax.f32 %v777_v38, 0.0  ;;  %v788_v49 = vadd.f32 %v1178_v39, %v1543_v9 }
 0x1be   : > { %v779_v42 = vpop.f32.mrf.mxu1 }
 0x1bf   : > { %v910_v45 = vadd.f32 %v909_v41, %v878_v40  ;;  %v780_v46 = vadd.f32 %v1543_v9, %v779_v42  ;;  %v882_v56 = vmax.f32 %v788_v49, 0.0 }
 0x1c0   : > { %v1181_v47 = vpop.f32.mrf.mxu1 }
 0x1c1   : > { %v911_v48 = vadd.f32 %v910_v45, %v879_v44  ;;  %v880_v50 = vmax.f32 %v780_v46, 0.0  ;;  %v801_v59 = vadd.f32 %v1181_v47, %v1543_v9 }
 0x1c2   : > { %v792_v51 = vpop.f32.mrf.mxu1 }
 0x1c3   : > { %v912_v53 = vadd.f32 %v911_v48, %v880_v50  ;;  %v793_v54 = vadd.f32 %v1543_v9, %v792_v51  ;;  %v885_v4 = vmax.f32 %v801_v59, 0.0 }
 0x1c4   : > { %v1182_v55 = vpop.f32.mrf.mxu1 }
 0x1c5   : > { %v913_v57 = vadd.f32 %v912_v53, %v881_v52  ;;  %v883_v60 = vmax.f32 %v793_v54, 0.0  ;;  %v804_v1 = vadd.f32 %v1182_v55, %v1543_v9 }
 0x1c6   : > { %v795_v58 = vpop.f32.mrf.mxu1 }
 0x1c7   : > { %v914_v61 = vadd.f32 %v913_v57, %v882_v56  ;;  %v796_v62 = vadd.f32 %v1543_v9, %v795_v58  ;;  %v886_v8 = vmax.f32 %v804_v1, 0.0 }
 0x1c8   : > { %v1185_v63 = vpop.f32.mrf.mxu1 }
 0x1c9   : > { %v915_v0 = vadd.f32 %v914_v61, %v883_v60  ;;  %v884_v2 = vmax.f32 %v796_v62, 0.0  ;;  %v817_v11 = vadd.f32 %v1185_v63, %v1543_v9 }
 0x1ca   : > { %v808_v3 = vpop.f32.mrf.mxu1 }
 0x1cb   : > { %v916_v5 = vadd.f32 %v915_v0, %v884_v2  ;;  %v809_v6 = vadd.f32 %v1543_v9, %v808_v3  ;;  %v889_v20 = vmax.f32 %v817_v11, 0.0 }
 0x1cc   : > { %v1186_v7 = vpop.f32.mrf.mxu1 }
 0x1cd   : > { %v917_v22 = vadd.f32 %v916_v5, %v885_v4  ;;  %v887_v12 = vmax.f32 %v809_v6, 0.0  ;;  %v820_v17 = vadd.f32 %v1186_v7, %v1543_v9 }
 0x1ce   : > { %v811_v10 = vpop.f32.mrf.mxu1 }
 0x1cf   : > { %v918_v13 = vadd.f32 %v917_v22, %v886_v8  ;;  %v812_v14 = vadd.f32 %v1543_v9, %v811_v10  ;;  %v890_v25 = vmax.f32 %v820_v17, 0.0 }
 0x1d0   : > { %v1189_v15 = vpop.f32.mrf.mxu1 }
 0x1d1   : > { %v919_v16 = vadd.f32 %v918_v13, %v887_v12  ;;  %v888_v18 = vmax.f32 %v812_v14, 0.0  ;;  %v833_v28 = vadd.f32 %v1189_v15, %v1543_v9  ;;  %v903_v13 = vld [vmem:[#allocation2] sm:$0x1] }
 0x1d2   : > { %v824_v19 = vpop.f32.mrf.mxu1 }
 0x1d3   : > { %v920_v21 = vadd.f32 %v919_v16, %v888_v18  ;;  %v825_v23 = vadd.f32 %v1543_v9, %v824_v19  ;;  %v893_v37 = vmax.f32 %v833_v28, 0.0 }
 0x1d4   : > { %v1190_v24 = vpop.f32.mrf.mxu1 }
 0x1d5   : > { %v921_v26 = vadd.f32 %v920_v21, %v889_v20  ;;  %v891_v29 = vmax.f32 %v825_v23, 0.0  ;;  %v836_v34 = vadd.f32 %v1190_v24, %v1543_v9 }
 0x1d6   : > { %v827_v27 = vpop.f32.mrf.mxu1 }
 0x1d7   : > { %v922_v30 = vadd.f32 %v921_v26, %v890_v25  ;;  %v828_v31 = vadd.f32 %v1543_v9, %v827_v27  ;;  %v894_v41 = vmax.f32 %v836_v34, 0.0 }
 0x1d8   : > { %v1193_v32 = vpop.f32.mrf.mxu1 }
 0x1d9   : > { %v923_v33 = vadd.f32 %v922_v30, %v891_v29  ;;  %v892_v35 = vmax.f32 %v828_v31, 0.0  ;;  %v849_v44 = vadd.f32 %v1193_v32, %v1543_v9 }
 0x1da   : > { %v840_v36 = vpop.f32.mrf.mxu1 }
 0x1db   : > { %v924_v38 = vadd.f32 %v923_v33, %v892_v35  ;;  %v841_v39 = vadd.f32 %v1543_v9, %v840_v36  ;;  %v897_v53 = vmax.f32 %v849_v44, 0.0 }
 0x1dc   : > { %v1194_v40 = vpop.f32.mrf.mxu1 }
 0x1dd   : > { %v925_v42 = vadd.f32 %v924_v38, %v893_v37  ;;  %v895_v45 = vmax.f32 %v841_v39, 0.0  ;;  %v852_v50 = vadd.f32 %v1194_v40, %v1543_v9 }
 0x1de   : > { %v843_v43 = vpop.f32.mrf.mxu1 }
 0x1df   : > { %v926_v46 = vadd.f32 %v925_v42, %v894_v41  ;;  %v844_v47 = vadd.f32 %v1543_v9, %v843_v43  ;;  %v898_v57 = vmax.f32 %v852_v50, 0.0 }
 0x1e0   : > { %v1197_v48 = vpop.f32.mrf.mxu1 }
 0x1e1   : > { %v927_v49 = vadd.f32 %v926_v46, %v895_v45  ;;  %v896_v51 = vmax.f32 %v844_v47, 0.0  ;;  %v865_v60 = vadd.f32 %v1197_v48, %v1543_v9 }
 0x1e2   : > { %v856_v52 = vpop.f32.mrf.mxu1 }
 0x1e3   : > { %v928_v54 = vadd.f32 %v927_v49, %v896_v51  ;;  %v857_v55 = vadd.f32 %v1543_v9, %v856_v52  ;;  %v901_v3 = vmax.f32 %v865_v60, 0.0 }
 0x1e4   : > { %v1198_v56 = vpop.f32.mrf.mxu1 }
 0x1e5   : > { %v929_v58 = vadd.f32 %v928_v54, %v897_v53  ;;  %v899_v61 = vmax.f32 %v857_v55, 0.0  ;;  %v868_v1 = vadd.f32 %v1198_v56, %v1543_v9 }
 0x1e6   : > { %v859_v59 = vpop.f32.mrf.mxu1 }
 0x1e7   : > { %v930_v62 = vadd.f32 %v929_v58, %v898_v57  ;;  %v860_v63 = vadd.f32 %v1543_v9, %v859_v59  ;;  %v902_v5 = vmax.f32 %v868_v1, 0.0 }
 0x1e9   : > { %v931_v0 = vadd.f32 %v930_v62, %v899_v61  ;;  %v900_v2 = vmax.f32 %v860_v63, 0.0 }
 0x1eb   : > { %v932_v4 = vadd.f32 %v931_v0, %v900_v2 }
 0x1ed   : > { %v933_v6 = vadd.f32 %v932_v4, %v901_v3 }
 0x1ef   : > { %v934_v7 = vadd.f32 %v933_v6, %v902_v5 }
 0x1f1   : > { %v935_v8 = vrot.slane %v934_v7, 4 }
 0x1f3   : > { %v936_v22 = vadd.f32 %v935_v8, %v934_v7 }
 0x1f5   : > { %v937_v10 = vrot.slane %v936_v22, 2 }
 0x1f7   : > { %v938_v11 = vadd.f32 %v937_v10, %v936_v22 }
 0x1f9   : > { %v939_v12 = vrot.slane %v938_v11, 1 }
 0x1fb   : > { %v940_v14 = vadd.f32 %v939_v12, %v938_v11 }
 0x1fd   : > { %v941_v15 = vadd.f32 %v940_v14, %v903_v13 }
 0x1ff   : > { %942 = vst [vmem:[#allocation2] sm:$0x1] %v941_v15 }
 0x206   : > { %v946_v9 = vld [vmem:[#allocation2] sm:$0x1] }
 0x207   : > { %v947_v16 = vmul.f32 0.00390625, %v946_v9 }
 0x209   : > { %948 = vst [vmem:[%s239_s9] sm:$0x1] %v947_v16 }
 0x20a   : > { %1287 = shalt.err (!%p1284_p5)
}
 0x20b   : > { %s1288_s24 = scalar_lea.hbm %s960_s13, 16  ;;  %s1292_s29 = scalar_lea.hbm %s1621_s5, 32 }
 0x20c   : > { %p1289_p6 = scmp.ne.s32.totalorder %s960_s13, %s1288_s24  ;;  %p1293_p10 = scmp.lt.s32.totalorder %s960_s13, %s1621_s5 }
 0x20d   : > { %p1294_p11 = scmp.lt.s32.totalorder %s1292_s29, %s1288_s24 }
 0x20e   : > { %p1290_p7 = pnand %p1289_p6, %p1424_p4 }
 0x20f   : > { %p1295_p12 = por %p1294_p11, %p1293_p10 }
 0x210   : > { %p1291_p9 = pneg %p1290_p7 }
 0x212   : > { %p1296_p13 = pnand %p1295_p12, %p1291_p9 }
 0x214   : > { %1299 = shalt.err (!%p1296_p13)
}
 0x215   : > { %1200 = dma.vmem_to_hbm [thread:$0]  (%p1424_p4), %s963_s10, 16, %s960_s13, %s950_s14  }
 0x216 PF: > { %p1206_p0 = scmp.ge.s32.totalorder %s1350_s23, 2  ;;  %s974_s9 = sand.u32 1, %s1330_s18  }
 0x217   : > { %s975_s11 = scalar_lea.sflag [#allocation4], %s974_s9 }
 0x218   : > { %p1203_p1 = pnand %p1206_p0, %p1431_p8 }
 0x21a   : > { %p1204_p2 = pneg %p1203_p1 }
 0x21c   : > { %1325 = dma.done.wait (%p1204_p2), %s975_s11, 16  }
 0x21d   : > { %1327 = vsyncadd (%p1204_p2), %s975_s11, 4294967280  ;;  %s18_s23 = sadd.s32 1, %s1350_s23   ;;  %s1624_s18 = smov %s1334_s19 }
 0x21e   : > { %p15_p3 = scmp.ge.s32.totalorder %s18_s23, 4   ;;  %s1625_s19 = smov %s1338_s20 }
 0x21f   : > { %s1626_s20 = smov %s1437_s6  ;;  %s1627_s21 = smov %s1346_s22 }
 0x220   : > { %s1628_s22 = smov %s1630_s26  ;;  %17 = sbr.rel (!%p15_p3) target bundleno = 4 (0x4), region = 83 }
 0x225   :  { %979 = vsyncpa [#allocation4], 1 }
 0x226   :  { %981 = vsyncpa [#allocation4 + $0x1], 1 }

</bundles_post_ra>
